<compile_context>
chip_gen: v6e
topology: v6e:2x2x1
jax: 0.10.0
libtpu: 0.0.40
codegen_flags: <defaults>
</compile_context>

<pallas_src>
from functools import partial

import jax
import jax.numpy as jnp
import numpy as np
from jax.experimental import pallas as pl
from jax.experimental.pallas import tpu as pltpu


def _edge_block_kernel(edge_ref, send_ref, recv_ref, eg_ref,
                       w1e_ref, nps_ref, npr_ref, gp_ref,
                       b1_ref, w2_ref, b2_ref,
                       out_ref, *, use_onehot):
    f32 = jnp.float32
    bf16 = jnp.bfloat16
    TE = edge_ref.shape[0]
    N = nps_ref.shape[0]
    B = gp_ref.shape[0]

    # First layer, edge-feature contribution (bf16 x bf16 -> f32 accumulation).
    h = jnp.dot(edge_ref[...], w1e_ref[...], preferred_element_type=f32)

    if use_onehot:
        # Gathers fused into the first layer as one-hot matmuls whose outputs
        # are already latent-wide (TE, latent) — no concat, MXU-friendly width.
        node_ids = jax.lax.broadcasted_iota(jnp.int32, (TE, N), 1)
        oh_s = (send_ref[...] == node_ids).astype(bf16)          # (TE, N)
        oh_r = (recv_ref[...] == node_ids).astype(bf16)          # (TE, N)
        h = h + jnp.dot(oh_s, nps_ref[...], preferred_element_type=f32)
        h = h + jnp.dot(oh_r, npr_ref[...], preferred_element_type=f32)
        batch_ids = jax.lax.broadcasted_iota(jnp.int32, (TE, B), 1)
        oh_g = (eg_ref[...] == batch_ids).astype(bf16)           # (TE, B)
        h = h + jnp.dot(oh_g, gp_ref[...], preferred_element_type=f32)
    else:
        # Large-N path: O(TE*latent) gather from the resident VMEM tables
        # instead of O(TE*N) one-hot matmuls (avoids (TE, N) intermediates).
        h = h + jnp.take(nps_ref[...], send_ref[...][:, 0], axis=0).astype(f32)
        h = h + jnp.take(npr_ref[...], recv_ref[...][:, 0], axis=0).astype(f32)
        h = h + jnp.take(gp_ref[...], eg_ref[...][:, 0], axis=0).astype(f32)

    # Bias + ReLU kept in f32 (v5e VPU has no bf16 path).
    h = jnp.maximum(h + b1_ref[...], 0.0)

    out = (jnp.dot(h.astype(bf16), w2_ref[...], preferred_element_type=f32)
           + b2_ref[...])
    out_ref[...] = out.astype(out_ref.dtype)


def _round_up(x, m):
    return ((x + m - 1) // m) * m


def edge_block_forward(node_attr, edge_attr, global_attr,
                       senders_idx, receivers_idx, eg_index, params,
                       *, edge_tile=1024, onehot_node_threshold=256):
    """node_attr (N,Dn), edge_attr (E,De), global_attr (B,Dg),
    senders_idx/receivers_idx/eg_index (E,) int32."""
    E, De = edge_attr.shape
    N, Dn = node_attr.shape
    B, Dg = global_attr.shape
    in_dim, latent = params["w1"].shape
    out_dim = params["w2"].shape[1]
    assert in_dim == De + 2 * Dn + Dg
    out_dtype = edge_attr.dtype

    if E == 0:
        # num_edges == 0 fallback of the PyTorch module.
        return jnp.zeros((0, out_dim), out_dtype)

    f32, bf16 = jnp.float32, jnp.bfloat16

    # --- Fuse gathers into the first layer: pre-project the node / global
    # tables into latent space once (plain XLA, scheduled around the kernel).
    w1 = params["w1"].astype(f32)
    w1_edge = w1[:De]                                              # (De, latent)
    node_proj_s = node_attr.astype(f32) @ w1[De:De + Dn]           # (N, latent)
    node_proj_r = node_attr.astype(f32) @ w1[De + Dn:De + 2 * Dn]  # (N, latent)
    glob_proj = global_attr.astype(f32) @ w1[De + 2 * Dn:]         # (B, latent)

    # --- Hoist bf16 casts of all MXU operands out of the kernel.
    edge_bf = edge_attr.astype(bf16)
    w1e_bf = w1_edge.astype(bf16)
    nps_bf = node_proj_s.astype(bf16)
    npr_bf = node_proj_r.astype(bf16)
    gp_bf = glob_proj.astype(bf16)
    w2_bf = params["w2"].astype(bf16)
    b1 = params["b1"].astype(f32).reshape(1, latent)
    b2 = params["b2"].astype(f32).reshape(1, out_dim)

    use_onehot = (N <= onehot_node_threshold) and (B <= onehot_node_threshold)
    # One-hot intermediates scale as (TE, N); cap TE while that path is active.
    max_tile = edge_tile if not use_onehot else min(edge_tile, 512)

    # Edge tile: multiple of 8, and small enough that the grid has >= 2 steps
    # so dimension_semantics=("parallel",) can shard across v7x's 2 TCs.
    TE = min(max_tile, max(8, _round_up((E + 1) // 2, 8)))
    E_pad = _round_up(E, TE)
    pad = E_pad - E

    send2d = senders_idx.astype(jnp.int32).reshape(E, 1)
    recv2d = receivers_idx.astype(jnp.int32).reshape(E, 1)
    eg2d = eg_index.astype(jnp.int32).reshape(E, 1)
    if pad:
        # Padded rows gather index 0 and compute garbage that is sliced off.
        edge_bf = jnp.pad(edge_bf, ((0, pad), (0, 0)))
        send2d = jnp.pad(send2d, ((0, pad), (0, 0)))
        recv2d = jnp.pad(recv2d, ((0, pad), (0, 0)))
        eg2d = jnp.pad(eg2d, ((0, pad), (0, 0)))

    grid = (E_pad // TE,)

    gather_flops = 2 * E_pad * (2 * N + B) * latent if use_onehot else 0
    flops = (2 * E_pad * De * latent + gather_flops
             + 2 * E_pad * latent * out_dim + E_pad * (2 * latent + out_dim))
    bytes_accessed = (E_pad * De * 2 + 3 * E_pad * 4 + E_pad * out_dim * 4
                      + (2 * N + B) * latent * 2
                      + (De * latent + latent * out_dim) * 2
                      + (latent + out_dim) * 4)
    cost = pl.CostEstimate(flops=int(flops), transcendentals=0,
                           bytes_accessed=int(bytes_accessed))

    kernel = partial(_edge_block_kernel, use_onehot=use_onehot)

    def run(buffered_residents):
        if buffered_residents:
            # Resident tables: constant index_map -> single buffer is enough.
            resident = lambda shape: pl.BlockSpec(
                shape, lambda i: (0, 0), pipeline_mode=pl.Buffered(1))
        else:
            resident = lambda shape: pl.BlockSpec(shape, lambda i: (0, 0))
        return pl.pallas_call(
            kernel,
            out_shape=jax.ShapeDtypeStruct((E_pad, out_dim), out_dtype),
            grid=grid,
            in_specs=[
                pl.BlockSpec((TE, De), lambda i: (i, 0)),   # edge tile (bf16)
                pl.BlockSpec((TE, 1), lambda i: (i, 0)),    # senders_idx
                pl.BlockSpec((TE, 1), lambda i: (i, 0)),    # receivers_idx
                pl.BlockSpec((TE, 1), lambda i: (i, 0)),    # eg_index
                resident((De, latent)),                     # w1[:De]
                resident((N, latent)),                      # node @ w1_send
                resident((N, latent)),                      # node @ w1_recv
                resident((B, latent)),                      # glob @ w1_glob
                resident((1, latent)),                      # b1
                resident((latent, out_dim)),                # w2
                resident((1, out_dim)),                     # b2
            ],
            out_specs=pl.BlockSpec((TE, out_dim), lambda i: (i, 0)),
            compiler_params=pltpu.CompilerParams(
                dimension_semantics=("parallel",),
                vmem_limit_bytes=32 * 1024 * 1024),
            cost_estimate=cost,
        )(edge_bf, send2d, recv2d, eg2d,
          w1e_bf, nps_bf, npr_bf, gp_bf, b1, w2_bf, b2)

    try:
        out = run(buffered_residents=True)
    except Exception:
        # pipeline_mode=pl.Buffered may be unavailable on this jax version;
        # fall back to default (double-buffered) resident blocks.
        out = run(buffered_residents=False)

    return out[:E] if pad else out


def reference_forward(node_attr, edge_attr, global_attr,
                      senders_idx, receivers_idx, eg_index, params):
    send = node_attr[senders_idx, :]
    recv = node_attr[receivers_idx, :]
    glob = global_attr[eg_index, :]
    collected = jnp.concatenate(
        [edge_attr, send, recv, glob], axis=-1).astype(jnp.float32)
    h = jnp.maximum(collected @ params["w1"] + params["b1"], 0.0)
    return h @ params["w2"] + params["b2"]


if __name__ == "__main__":
    # Small synthetic graph.
    N, E, B = 16, 32, 2            # nodes, edges, batches
    Dn, De, Dg = 8, 8, 4           # node / edge / global feature dims
    latent, out_dim = 32, 8
    in_dim = De + 2 * Dn + Dg      # edges + sender + receiver + globals = 28

    key = jax.random.PRNGKey(0)
    k = jax.random.split(key, 10)
    node_attr = jax.random.normal(k[0], (N, Dn), jnp.float32)
    edge_attr = jax.random.normal(k[1], (E, De), jnp.float32)
    global_attr = jax.random.normal(k[2], (B, Dg), jnp.float32)
    senders_idx = jax.random.randint(k[3], (E,), 0, N, jnp.int32)
    receivers_idx = jax.random.randint(k[4], (E,), 0, N, jnp.int32)
    eg_index = (jnp.arange(E) // (E // B)).astype(jnp.int32)

    # Deterministic MLP parameters (shapes from get_default_net(in_dim, out_dim)).
    params = {
        "w1": jax.random.normal(k[5], (in_dim, latent), jnp.float32) * 0.1,
        "b1": jax.random.normal(k[6], (1, latent), jnp.float32) * 0.1,
        "w2": jax.random.normal(k[7], (latent, out_dim), jnp.float32) * 0.1,
        "b2": jax.random.normal(k[8], (1, out_dim), jnp.float32) * 0.1,
    }

    out = edge_block_forward(node_attr, edge_attr, global_attr,
                             senders_idx, receivers_idx, eg_index, params)
    jax.block_until_ready(out)

    ref = reference_forward(node_attr, edge_attr, global_attr,
                            senders_idx, receivers_idx, eg_index, params)
    # bf16 MXU inputs (f32 accumulation) -> relaxed tolerance.
    np.testing.assert_allclose(np.asarray(out), np.asarray(ref),
                               rtol=2e-2, atol=2e-2)
    print("KERNEL_OK")
</pallas_src>

<mosaic_0001>
module attributes {stable_mosaic.version = 11 : i64} {
  func.func @_edge_block_kernel(%arg0: i32, %arg1: memref<16x8xbf16, #tpu.memory_space<vmem>>, %arg2: memref<16x1xi32, #tpu.memory_space<vmem>>, %arg3: memref<16x1xi32, #tpu.memory_space<vmem>>, %arg4: memref<16x1xi32, #tpu.memory_space<vmem>>, %arg5: memref<8x32xbf16, #tpu.memory_space<vmem>>, %arg6: memref<16x32xbf16, #tpu.memory_space<vmem>>, %arg7: memref<16x32xbf16, #tpu.memory_space<vmem>>, %arg8: memref<2x32xbf16, #tpu.memory_space<vmem>>, %arg9: memref<1x32xf32, #tpu.memory_space<vmem>>, %arg10: memref<32x8xbf16, #tpu.memory_space<vmem>>, %arg11: memref<1x8xf32, #tpu.memory_space<vmem>>, %arg12: memref<16x8xf32, #tpu.memory_space<vmem>>) attributes {dimension_semantics = [#tpu.dimension_semantics<parallel>], iteration_bounds = array<i64: 2>, scalar_prefetch = 0 : i64, scratch_operands = 0 : i64, tpu.core_type = #tpu.core_type<tc>, window_params = [{transform_indices = @transform_0, window_bounds = array<i64: 16, 8>}, {transform_indices = @transform_1, window_bounds = array<i64: 16, 1>}, {transform_indices = @transform_2, window_bounds = array<i64: 16, 1>}, {transform_indices = @transform_3, window_bounds = array<i64: 16, 1>}, {pipeline_mode = #tpu.pipeline_mode<synchronous>, transform_indices = @transform_4, window_bounds = array<i64: 8, 32>}, {pipeline_mode = #tpu.pipeline_mode<synchronous>, transform_indices = @transform_5, window_bounds = array<i64: 16, 32>}, {pipeline_mode = #tpu.pipeline_mode<synchronous>, transform_indices = @transform_6, window_bounds = array<i64: 16, 32>}, {pipeline_mode = #tpu.pipeline_mode<synchronous>, transform_indices = @transform_7, window_bounds = array<i64: 2, 32>}, {pipeline_mode = #tpu.pipeline_mode<synchronous>, transform_indices = @transform_8, window_bounds = array<i64: 1, 32>}, {pipeline_mode = #tpu.pipeline_mode<synchronous>, transform_indices = @transform_9, window_bounds = array<i64: 32, 8>}, {pipeline_mode = #tpu.pipeline_mode<synchronous>, transform_indices = @transform_10, window_bounds = array<i64: 1, 8>}, {transform_indices = @transform_11, window_bounds = array<i64: 16, 8>}]} {
    %c0 = arith.constant 0 : index
    %c0_0 = arith.constant 0 : index
    %0 = vector.load %arg1[%c0, %c0_0] : memref<16x8xbf16, #tpu.memory_space<vmem>>, vector<16x8xbf16>
    %c0_1 = arith.constant 0 : index
    %c0_2 = arith.constant 0 : index
    %1 = vector.load %arg5[%c0_1, %c0_2] : memref<8x32xbf16, #tpu.memory_space<vmem>>, vector<8x32xbf16>
    %cst = arith.constant dense<0.000000e+00> : vector<16x32xf32>
    %2 = tpu.matmul %0, %1, %cst {dimension_numbers = #tpu.dot_dimension_numbers<[1], [0], [0], [1], [0, 0, 1, 1], [], []>} : vector<16x8xbf16>, vector<8x32xbf16>, vector<16x32xf32> -> vector<16x32xf32>
    %3 = tpu.iota {dimensions = array<i32: 1>} : vector<16x16xi32>
    %c0_3 = arith.constant 0 : index
    %c0_4 = arith.constant 0 : index
    %4 = vector.load %arg2[%c0_3, %c0_4] : memref<16x1xi32, #tpu.memory_space<vmem>>, vector<16x1xi32>
    %5 = vector.broadcast %4 : vector<16x1xi32> to vector<16x16xi32>
    %6 = arith.cmpi eq, %5, %3 : vector<16x16xi32>
    %7 = arith.extui %6 : vector<16x16xi1> to vector<16x16xi32>
    %8 = arith.sitofp %7 : vector<16x16xi32> to vector<16x16xf32>
    %9 = arith.truncf %8 : vector<16x16xf32> to vector<16x16xbf16>
    %c0_5 = arith.constant 0 : index
    %c0_6 = arith.constant 0 : index
    %10 = vector.load %arg3[%c0_5, %c0_6] : memref<16x1xi32, #tpu.memory_space<vmem>>, vector<16x1xi32>
    %11 = vector.broadcast %10 : vector<16x1xi32> to vector<16x16xi32>
    %12 = arith.cmpi eq, %11, %3 : vector<16x16xi32>
    %13 = arith.extui %12 : vector<16x16xi1> to vector<16x16xi32>
    %14 = arith.sitofp %13 : vector<16x16xi32> to vector<16x16xf32>
    %15 = arith.truncf %14 : vector<16x16xf32> to vector<16x16xbf16>
    %c0_7 = arith.constant 0 : index
    %c0_8 = arith.constant 0 : index
    %16 = vector.load %arg6[%c0_7, %c0_8] : memref<16x32xbf16, #tpu.memory_space<vmem>>, vector<16x32xbf16>
    %cst_9 = arith.constant dense<0.000000e+00> : vector<16x32xf32>
    %17 = tpu.matmul %9, %16, %cst_9 {dimension_numbers = #tpu.dot_dimension_numbers<[1], [0], [0], [1], [0, 0, 1, 1], [], []>} : vector<16x16xbf16>, vector<16x32xbf16>, vector<16x32xf32> -> vector<16x32xf32>
    %18 = arith.addf %2, %17 : vector<16x32xf32>
    %c0_10 = arith.constant 0 : index
    %c0_11 = arith.constant 0 : index
    %19 = vector.load %arg7[%c0_10, %c0_11] : memref<16x32xbf16, #tpu.memory_space<vmem>>, vector<16x32xbf16>
    %cst_12 = arith.constant dense<0.000000e+00> : vector<16x32xf32>
    %20 = tpu.matmul %15, %19, %cst_12 {dimension_numbers = #tpu.dot_dimension_numbers<[1], [0], [0], [1], [0, 0, 1, 1], [], []>} : vector<16x16xbf16>, vector<16x32xbf16>, vector<16x32xf32> -> vector<16x32xf32>
    %21 = arith.addf %18, %20 : vector<16x32xf32>
    %22 = tpu.iota {dimensions = array<i32: 1>} : vector<16x2xi32>
    %c0_13 = arith.constant 0 : index
    %c0_14 = arith.constant 0 : index
    %23 = vector.load %arg4[%c0_13, %c0_14] : memref<16x1xi32, #tpu.memory_space<vmem>>, vector<16x1xi32>
    %24 = vector.broadcast %23 : vector<16x1xi32> to vector<16x2xi32>
    %25 = arith.cmpi eq, %24, %22 : vector<16x2xi32>
    %26 = arith.extui %25 : vector<16x2xi1> to vector<16x2xi32>
    %27 = arith.sitofp %26 : vector<16x2xi32> to vector<16x2xf32>
    %28 = arith.truncf %27 : vector<16x2xf32> to vector<16x2xbf16>
    %c0_15 = arith.constant 0 : index
    %c0_16 = arith.constant 0 : index
    %29 = vector.load %arg8[%c0_15, %c0_16] : memref<2x32xbf16, #tpu.memory_space<vmem>>, vector<2x32xbf16>
    %cst_17 = arith.constant dense<0.000000e+00> : vector<16x32xf32>
    %30 = tpu.matmul %28, %29, %cst_17 {dimension_numbers = #tpu.dot_dimension_numbers<[1], [0], [0], [1], [0, 0, 1, 1], [], []>} : vector<16x2xbf16>, vector<2x32xbf16>, vector<16x32xf32> -> vector<16x32xf32>
    %31 = arith.addf %21, %30 : vector<16x32xf32>
    %c0_18 = arith.constant 0 : index
    %c0_19 = arith.constant 0 : index
    %32 = vector.load %arg9[%c0_18, %c0_19] : memref<1x32xf32, #tpu.memory_space<vmem>>, vector<1x32xf32>
    %33 = vector.broadcast %32 : vector<1x32xf32> to vector<16x32xf32>
    %34 = arith.addf %31, %33 : vector<16x32xf32>
    %cst_20 = arith.constant 0.000000e+00 : f32
    %35 = vector.broadcast %cst_20 : f32 to vector<16x32xf32>
    %36 = arith.maximumf %34, %35 : vector<16x32xf32>
    %37 = arith.truncf %36 : vector<16x32xf32> to vector<16x32xbf16>
    %c0_21 = arith.constant 0 : index
    %c0_22 = arith.constant 0 : index
    %38 = vector.load %arg10[%c0_21, %c0_22] : memref<32x8xbf16, #tpu.memory_space<vmem>>, vector<32x8xbf16>
    %cst_23 = arith.constant dense<0.000000e+00> : vector<16x8xf32>
    %39 = tpu.matmul %37, %38, %cst_23 {dimension_numbers = #tpu.dot_dimension_numbers<[1], [0], [0], [1], [0, 0, 1, 1], [], []>} : vector<16x32xbf16>, vector<32x8xbf16>, vector<16x8xf32> -> vector<16x8xf32>
    %c0_24 = arith.constant 0 : index
    %c0_25 = arith.constant 0 : index
    %40 = vector.load %arg11[%c0_24, %c0_25] : memref<1x8xf32, #tpu.memory_space<vmem>>, vector<1x8xf32>
    %41 = vector.broadcast %40 : vector<1x8xf32> to vector<16x8xf32>
    %42 = arith.addf %39, %41 : vector<16x8xf32>
    %c0_26 = arith.constant 0 : index
    %c0_27 = arith.constant 0 : index
    %43 = vector.load %arg12[%c0_26, %c0_27] : memref<16x8xf32, #tpu.memory_space<vmem>>, vector<16x8xf32>
    tpu.vector_store %arg12[%c0_26, %c0_27], %42 {strides = array<i32>} : memref<16x8xf32, #tpu.memory_space<vmem>>, vector<16x8xf32>,
    return
  }
  func.func @transform_0(%arg0: i32) -> (i32, i32) {
    %c0_i32 = arith.constant 0 : i32
    %c0_i32_0 = arith.constant 0 : i32
    return %arg0, %c0_i32 : i32, i32
  }
  func.func @transform_1(%arg0: i32) -> (i32, i32) {
    %c0_i32 = arith.constant 0 : i32
    %c0_i32_0 = arith.constant 0 : i32
    return %arg0, %c0_i32 : i32, i32
  }
  func.func @transform_2(%arg0: i32) -> (i32, i32) {
    %c0_i32 = arith.constant 0 : i32
    %c0_i32_0 = arith.constant 0 : i32
    return %arg0, %c0_i32 : i32, i32
  }
  func.func @transform_3(%arg0: i32) -> (i32, i32) {
    %c0_i32 = arith.constant 0 : i32
    %c0_i32_0 = arith.constant 0 : i32
    return %arg0, %c0_i32 : i32, i32
  }
  func.func @transform_4(%arg0: i32) -> (i32, i32) {
    %c0_i32 = arith.constant 0 : i32
    %c0_i32_0 = arith.constant 0 : i32
    %c0_i32_1 = arith.constant 0 : i32
    return %c0_i32, %c0_i32_0 : i32, i32
  }
  func.func @transform_5(%arg0: i32) -> (i32, i32) {
    %c0_i32 = arith.constant 0 : i32
    %c0_i32_0 = arith.constant 0 : i32
    %c0_i32_1 = arith.constant 0 : i32
    return %c0_i32, %c0_i32_0 : i32, i32
  }
  func.func @transform_6(%arg0: i32) -> (i32, i32) {
    %c0_i32 = arith.constant 0 : i32
    %c0_i32_0 = arith.constant 0 : i32
    %c0_i32_1 = arith.constant 0 : i32
    return %c0_i32, %c0_i32_0 : i32, i32
  }
  func.func @transform_7(%arg0: i32) -> (i32, i32) {
    %c0_i32 = arith.constant 0 : i32
    %c0_i32_0 = arith.constant 0 : i32
    %c0_i32_1 = arith.constant 0 : i32
    return %c0_i32, %c0_i32_0 : i32, i32
  }
  func.func @transform_8(%arg0: i32) -> (i32, i32) {
    %c0_i32 = arith.constant 0 : i32
    %c0_i32_0 = arith.constant 0 : i32
    %c0_i32_1 = arith.constant 0 : i32
    return %c0_i32, %c0_i32_0 : i32, i32
  }
  func.func @transform_9(%arg0: i32) -> (i32, i32) {
    %c0_i32 = arith.constant 0 : i32
    %c0_i32_0 = arith.constant 0 : i32
    %c0_i32_1 = arith.constant 0 : i32
    return %c0_i32, %c0_i32_0 : i32, i32
  }
  func.func @transform_10(%arg0: i32) -> (i32, i32) {
    %c0_i32 = arith.constant 0 : i32
    %c0_i32_0 = arith.constant 0 : i32
    %c0_i32_1 = arith.constant 0 : i32
    return %c0_i32, %c0_i32_0 : i32, i32
  }
  func.func @transform_11(%arg0: i32) -> (i32, i32) {
    %c0_i32 = arith.constant 0 : i32
    %c0_i32_0 = arith.constant 0 : i32
    return %arg0, %c0_i32 : i32, i32
  }
}

module attributes {stable_mosaic.version = 11 : i64} {
  func.func @_edge_block_kernel(%arg0: i32, %arg1: memref<16x8xbf16, #tpu.memory_space<vmem>>, %arg2: memref<16x1xi32, #tpu.memory_space<vmem>>, %arg3: memref<16x1xi32, #tpu.memory_space<vmem>>, %arg4: memref<16x1xi32, #tpu.memory_space<vmem>>, %arg5: memref<8x32xbf16, #tpu.memory_space<vmem>>, %arg6: memref<16x32xbf16, #tpu.memory_space<vmem>>, %arg7: memref<16x32xbf16, #tpu.memory_space<vmem>>, %arg8: memref<2x32xbf16, #tpu.memory_space<vmem>>, %arg9: memref<1x32xf32, #tpu.memory_space<vmem>>, %arg10: memref<32x8xbf16, #tpu.memory_space<vmem>>, %arg11: memref<1x8xf32, #tpu.memory_space<vmem>>, %arg12: memref<16x8xf32, #tpu.memory_space<vmem>>) attributes {dimension_semantics = [#tpu.dimension_semantics<parallel>], iteration_bounds = array<i64: 2>, scalar_prefetch = 0 : i64, scratch_operands = 0 : i64, tpu.core_type = #tpu.core_type<tc>, window_params = [{transform_indices = @transform_0, window_bounds = array<i64: 16, 8>}, {transform_indices = @transform_1, window_bounds = array<i64: 16, 1>}, {transform_indices = @transform_2, window_bounds = array<i64: 16, 1>}, {transform_indices = @transform_3, window_bounds = array<i64: 16, 1>}, {pipeline_mode = #tpu.pipeline_mode<synchronous>, transform_indices = @transform_4, window_bounds = array<i64: 8, 32>}, {pipeline_mode = #tpu.pipeline_mode<synchronous>, transform_indices = @transform_5, window_bounds = array<i64: 16, 32>}, {pipeline_mode = #tpu.pipeline_mode<synchronous>, transform_indices = @transform_6, window_bounds = array<i64: 16, 32>}, {pipeline_mode = #tpu.pipeline_mode<synchronous>, transform_indices = @transform_7, window_bounds = array<i64: 2, 32>}, {pipeline_mode = #tpu.pipeline_mode<synchronous>, transform_indices = @transform_8, window_bounds = array<i64: 1, 32>}, {pipeline_mode = #tpu.pipeline_mode<synchronous>, transform_indices = @transform_9, window_bounds = array<i64: 32, 8>}, {pipeline_mode = #tpu.pipeline_mode<synchronous>, transform_indices = @transform_10, window_bounds = array<i64: 1, 8>}, {transform_indices = @transform_11, window_bounds = array<i64: 16, 8>}]} {
    %c0 = arith.constant 0 : index
    %c0_0 = arith.constant 0 : index
    %0 = vector.load %arg1[%c0, %c0_0] : memref<16x8xbf16, #tpu.memory_space<vmem>>, vector<16x8xbf16>
    %c0_1 = arith.constant 0 : index
    %c0_2 = arith.constant 0 : index
    %1 = vector.load %arg5[%c0_1, %c0_2] : memref<8x32xbf16, #tpu.memory_space<vmem>>, vector<8x32xbf16>
    %cst = arith.constant dense<0.000000e+00> : vector<16x32xf32>
    %2 = tpu.matmul %0, %1, %cst {dimension_numbers = #tpu.dot_dimension_numbers<[1], [0], [0], [1], [0, 0, 1, 1], [], []>} : vector<16x8xbf16>, vector<8x32xbf16>, vector<16x32xf32> -> vector<16x32xf32>
    %3 = tpu.iota {dimensions = array<i32: 1>} : vector<16x16xi32>
    %c0_3 = arith.constant 0 : index
    %c0_4 = arith.constant 0 : index
    %4 = vector.load %arg2[%c0_3, %c0_4] : memref<16x1xi32, #tpu.memory_space<vmem>>, vector<16x1xi32>
    %5 = vector.broadcast %4 : vector<16x1xi32> to vector<16x16xi32>
    %6 = arith.cmpi eq, %5, %3 : vector<16x16xi32>
    %7 = arith.extui %6 : vector<16x16xi1> to vector<16x16xi32>
    %8 = arith.sitofp %7 : vector<16x16xi32> to vector<16x16xf32>
    %9 = arith.truncf %8 : vector<16x16xf32> to vector<16x16xbf16>
    %c0_5 = arith.constant 0 : index
    %c0_6 = arith.constant 0 : index
    %10 = vector.load %arg3[%c0_5, %c0_6] : memref<16x1xi32, #tpu.memory_space<vmem>>, vector<16x1xi32>
    %11 = vector.broadcast %10 : vector<16x1xi32> to vector<16x16xi32>
    %12 = arith.cmpi eq, %11, %3 : vector<16x16xi32>
    %13 = arith.extui %12 : vector<16x16xi1> to vector<16x16xi32>
    %14 = arith.sitofp %13 : vector<16x16xi32> to vector<16x16xf32>
    %15 = arith.truncf %14 : vector<16x16xf32> to vector<16x16xbf16>
    %c0_7 = arith.constant 0 : index
    %c0_8 = arith.constant 0 : index
    %16 = vector.load %arg6[%c0_7, %c0_8] : memref<16x32xbf16, #tpu.memory_space<vmem>>, vector<16x32xbf16>
    %cst_9 = arith.constant dense<0.000000e+00> : vector<16x32xf32>
    %17 = tpu.matmul %9, %16, %cst_9 {dimension_numbers = #tpu.dot_dimension_numbers<[1], [0], [0], [1], [0, 0, 1, 1], [], []>} : vector<16x16xbf16>, vector<16x32xbf16>, vector<16x32xf32> -> vector<16x32xf32>
    %18 = arith.addf %2, %17 : vector<16x32xf32>
    %c0_10 = arith.constant 0 : index
    %c0_11 = arith.constant 0 : index
    %19 = vector.load %arg7[%c0_10, %c0_11] : memref<16x32xbf16, #tpu.memory_space<vmem>>, vector<16x32xbf16>
    %cst_12 = arith.constant dense<0.000000e+00> : vector<16x32xf32>
    %20 = tpu.matmul %15, %19, %cst_12 {dimension_numbers = #tpu.dot_dimension_numbers<[1], [0], [0], [1], [0, 0, 1, 1], [], []>} : vector<16x16xbf16>, vector<16x32xbf16>, vector<16x32xf32> -> vector<16x32xf32>
    %21 = arith.addf %18, %20 : vector<16x32xf32>
    %22 = tpu.iota {dimensions = array<i32: 1>} : vector<16x2xi32>
    %c0_13 = arith.constant 0 : index
    %c0_14 = arith.constant 0 : index
    %23 = vector.load %arg4[%c0_13, %c0_14] : memref<16x1xi32, #tpu.memory_space<vmem>>, vector<16x1xi32>
    %24 = vector.broadcast %23 : vector<16x1xi32> to vector<16x2xi32>
    %25 = arith.cmpi eq, %24, %22 : vector<16x2xi32>
    %26 = arith.extui %25 : vector<16x2xi1> to vector<16x2xi32>
    %27 = arith.sitofp %26 : vector<16x2xi32> to vector<16x2xf32>
    %28 = arith.truncf %27 : vector<16x2xf32> to vector<16x2xbf16>
    %c0_15 = arith.constant 0 : index
    %c0_16 = arith.constant 0 : index
    %29 = vector.load %arg8[%c0_15, %c0_16] : memref<2x32xbf16, #tpu.memory_space<vmem>>, vector<2x32xbf16>
    %cst_17 = arith.constant dense<0.000000e+00> : vector<16x32xf32>
    %30 = tpu.matmul %28, %29, %cst_17 {dimension_numbers = #tpu.dot_dimension_numbers<[1], [0], [0], [1], [0, 0, 1, 1], [], []>} : vector<16x2xbf16>, vector<2x32xbf16>, vector<16x32xf32> -> vector<16x32xf32>
    %31 = arith.addf %21, %30 : vector<16x32xf32>
    %c0_18 = arith.constant 0 : index
    %c0_19 = arith.constant 0 : index
    %32 = vector.load %arg9[%c0_18, %c0_19] : memref<1x32xf32, #tpu.memory_space<vmem>>, vector<1x32xf32>
    %33 = vector.broadcast %32 : vector<1x32xf32> to vector<16x32xf32>
    %34 = arith.addf %31, %33 : vector<16x32xf32>
    %cst_20 = arith.constant 0.000000e+00 : f32
    %35 = vector.broadcast %cst_20 : f32 to vector<16x32xf32>
    %36 = arith.maximumf %34, %35 : vector<16x32xf32>
    %37 = arith.truncf %36 : vector<16x32xf32> to vector<16x32xbf16>
    %c0_21 = arith.constant 0 : index
    %c0_22 = arith.constant 0 : index
    %38 = vector.load %arg10[%c0_21, %c0_22] : memref<32x8xbf16, #tpu.memory_space<vmem>>, vector<32x8xbf16>
    %cst_23 = arith.constant dense<0.000000e+00> : vector<16x8xf32>
    %39 = tpu.matmul %37, %38, %cst_23 {dimension_numbers = #tpu.dot_dimension_numbers<[1], [0], [0], [1], [0, 0, 1, 1], [], []>} : vector<16x32xbf16>, vector<32x8xbf16>, vector<16x8xf32> -> vector<16x8xf32>
    %c0_24 = arith.constant 0 : index
    %c0_25 = arith.constant 0 : index
    %40 = vector.load %arg11[%c0_24, %c0_25] : memref<1x8xf32, #tpu.memory_space<vmem>>, vector<1x8xf32>
    %41 = vector.broadcast %40 : vector<1x8xf32> to vector<16x8xf32>
    %42 = arith.addf %39, %41 : vector<16x8xf32>
    %c0_26 = arith.constant 0 : index
    %c0_27 = arith.constant 0 : index
    %43 = vector.load %arg12[%c0_26, %c0_27] : memref<16x8xf32, #tpu.memory_space<vmem>>, vector<16x8xf32>
    tpu.vector_store %arg12[%c0_26, %c0_27], %42 {strides = array<i32>} : memref<16x8xf32, #tpu.memory_space<vmem>>, vector<16x8xf32>,
    return
  }
  func.func @transform_0(%arg0: i32) -> (i32, i32) {
    %c0_i32 = arith.constant 0 : i32
    %c0_i32_0 = arith.constant 0 : i32
    return %arg0, %c0_i32 : i32, i32
  }
  func.func @transform_1(%arg0: i32) -> (i32, i32) {
    %c0_i32 = arith.constant 0 : i32
    %c0_i32_0 = arith.constant 0 : i32
    return %arg0, %c0_i32 : i32, i32
  }
  func.func @transform_2(%arg0: i32) -> (i32, i32) {
    %c0_i32 = arith.constant 0 : i32
    %c0_i32_0 = arith.constant 0 : i32
    return %arg0, %c0_i32 : i32, i32
  }
  func.func @transform_3(%arg0: i32) -> (i32, i32) {
    %c0_i32 = arith.constant 0 : i32
    %c0_i32_0 = arith.constant 0 : i32
    return %arg0, %c0_i32 : i32, i32
  }
  func.func @transform_4(%arg0: i32) -> (i32, i32) {
    %c0_i32 = arith.constant 0 : i32
    %c0_i32_0 = arith.constant 0 : i32
    %c0_i32_1 = arith.constant 0 : i32
    return %c0_i32, %c0_i32_0 : i32, i32
  }
  func.func @transform_5(%arg0: i32) -> (i32, i32) {
    %c0_i32 = arith.constant 0 : i32
    %c0_i32_0 = arith.constant 0 : i32
    %c0_i32_1 = arith.constant 0 : i32
    return %c0_i32, %c0_i32_0 : i32, i32
  }
  func.func @transform_6(%arg0: i32) -> (i32, i32) {
    %c0_i32 = arith.constant 0 : i32
    %c0_i32_0 = arith.constant 0 : i32
    %c0_i32_1 = arith.constant 0 : i32
    return %c0_i32, %c0_i32_0 : i32, i32
  }
  func.func @transform_7(%arg0: i32) -> (i32, i32) {
    %c0_i32 = arith.constant 0 : i32
    %c0_i32_0 = arith.constant 0 : i32
    %c0_i32_1 = arith.constant 0 : i32
    return %c0_i32, %c0_i32_0 : i32, i32
  }
  func.func @transform_8(%arg0: i32) -> (i32, i32) {
    %c0_i32 = arith.constant 0 : i32
    %c0_i32_0 = arith.constant 0 : i32
    %c0_i32_1 = arith.constant 0 : i32
    return %c0_i32, %c0_i32_0 : i32, i32
  }
  func.func @transform_9(%arg0: i32) -> (i32, i32) {
    %c0_i32 = arith.constant 0 : i32
    %c0_i32_0 = arith.constant 0 : i32
    %c0_i32_1 = arith.constant 0 : i32
    return %c0_i32, %c0_i32_0 : i32, i32
  }
  func.func @transform_10(%arg0: i32) -> (i32, i32) {
    %c0_i32 = arith.constant 0 : i32
    %c0_i32_0 = arith.constant 0 : i32
    %c0_i32_1 = arith.constant 0 : i32
    return %c0_i32, %c0_i32_0 : i32, i32
  }
  func.func @transform_11(%arg0: i32) -> (i32, i32) {
    %c0_i32 = arith.constant 0 : i32
    %c0_i32_0 = arith.constant 0 : i32
    return %arg0, %c0_i32 : i32, i32
  }
}

</mosaic_0001>

<bundles_post_ra>
// kernel: tpu_custom_call.1
= control target key start
LH: loop header
LB: loop body
LE: loop exit
PB: predicated region body
PF: predicated region fallthrough
CT: control target
= control target key end

     0   :  { %s1061_s17 = smov 0   ;;  %s1144_s0 = inlined_call_operand.vmem [shape: bf16[32,8], index: 0, kind: input, shape index: {}]   ;;  %s1145_s1 = inlined_call_operand.vmem [shape: s32[32,1], index: 1, kind: input, shape index: {}]   ;;  %s1146_s2 = inlined_call_operand.vmem [shape: s32[32,1], index: 2, kind: input, shape index: {}]   ;;  %s1147_s3 = inlined_call_operand.vmem [shape: s32[32,1], index: 3, kind: input, shape index: {}]   ;;  %s1148_s4 = inlined_call_operand.vmem [shape: bf16[8,32], index: 4, kind: input, shape index: {}]   ;;  %s1149_s5 = inlined_call_operand.vmem [shape: bf16[16,32], index: 5, kind: input, shape index: {}]   ;;  %s1150_s6 = inlined_call_operand.vmem [shape: bf16[16,32], index: 6, kind: input, shape index: {}]   ;;  %s1151_s7 = inlined_call_operand.vmem [shape: bf16[2,32], index: 7, kind: input, shape index: {}]   ;;  %s1152_s8 = inlined_call_operand.vmem [shape: f32[1,32], index: 8, kind: input, shape index: {}]   ;;  %s1153_s9 = inlined_call_operand.vmem [shape: bf16[32,8], index: 9, kind: input, shape index: {}]   ;;  %s1154_s10 = inlined_call_operand.vmem [shape: f32[1,8], index: 10, kind: input, shape index: {}]   ;;  %s1155_s11 = inlined_call_operand.vmem [shape: f32[32,8], index: 11, kind: output, shape index: {}]  }
   0x1 LB: > { %s894_s18 = sadd.s32 4294967295, %s996_s17   ;;  %p898_p0 = scmp.ge.s32.totalorder %s996_s17, 1  ;;  %s996_s17 = sphi %s1061_s17, %s21_s17  }
   0x2   : > { %p371_p1 = scmp.lt.s32.totalorder %s996_s17, 3 }
   0x4   : > { %p372_p2 = pnand %p898_p0, %p371_p1 }
   0x5   : > { %s899_s19 = sshll.u32 (!%p372_p2), %s894_s18, 1 }
   0x6   : > { %375 = sbr.rel (%p372_p2) target bundleno = 563 (0x233), region = 64  ;;  %p427_p3 = scmp.lt.s32.totalorder (!%p372_p2), %s899_s19, 3 }
   0xb   : > { %v998_v0 = vmov 0   ;;  %v999_v1 = vmov 0.0   ;;  %s1157_s19 = smov (!%p427_p3, %s899_s19), 3  ;;  %v459_v2 = vld [vmem:[%s1148_s4] sm:$0xf]  ;;  %vm554_vm0 = vcmask 1043456   ;;  %v460_v14 = vlaneseq }
   0xc   : > { %984 = vset.pattern.permute.xlu1 %v998_v0  ;;  %983 = vset.pattern.permute.xlu0 %v998_v0  ;;  %v556_v3 = vsel %vm554_vm0, %v459_v2, 0  ;;  %s1074_s22 = sshll.u32 %s1157_s19, 3  ;;  %s900_s23 = sshll.u32 %s1157_s19, 2  ;;  %vm1000_vm1 = vmmov 0   ;;  %v985_v8 = vld [vmem:[%s1149_s5] sm:$0xff]   ;;  %vm550_vm2 = vcmask 64512  }
   0xd   : > { %946 = vmatprep.subr.bf16.mxu1 %v999_v1  ;;  %940 = vmatprep.subr.bf16.mxu0 %v999_v1  ;;  %s442_s26 = scalar_lea.vmem %s1146_s2, %s1074_s22  ;;  %s436_s29 = scalar_lea.vmem %s1145_s1, %s1074_s22  ;;  %v668_v10 = vld [vmem:[%s1151_s7] sm:$0x1]  ;;  %vm673_vm3 = vcmask 1040384   ;;  %v461_v15 = vand.u32 127, %v460_v14  ;;  %vm500_vm6 = vcmask 130048   ;;  %vm669_vm11 = vcmask 15360  }
   0xe   : > { %947 = vmatpush3.bf16.msra.mxu1 %v556_v3  ;;  %948 = vmatprep.mubr.msk.bf16.mxu1 %vm1000_vm1, %v999_v1  ;;  %v477_v4 = vld [vmem:[%s442_s26] sm:$0xff]  ;;  %s430_s13 = scalar_lea.vmem %s1144_s0, %s900_s23  ;;  %v478_v6 = vld [vmem:[%s442_s26 + $0x8] sm:$0xff]  ;;  %s448_s19 = scalar_lea.vmem %s1147_s3, %s1074_s22  ;;  %v675_v11 = vsel %vm673_vm3, %v668_v10, 0  ;;  %vm755_vm12 = vcmask 261120  }
   0xf   : > { %942 = vmatprep.mubr.msk.bf16.mxu0 %vm1000_vm1, %v999_v1  ;;  %v462_v5 = vld [vmem:[%s436_s29] sm:$0xff]  ;;  %958 = vmatprep.subr.bf16.mxu1 %v999_v1  ;;  %v463_v7 = vld [vmem:[%s436_s29 + $0x8] sm:$0xff]  ;;  %s454_s16 = scalar_lea.vmem %s1155_s11, %s1074_s22 }
  0x10   : > { %480 = vperm.xlu1 %984, %v477_v4   ;;  %465 = vperm.xlu0 %983, %v462_v5   ;;  %v986_v9 = vld [vmem:[%s430_s13] sm:$0xff]   ;;  %v654_v12 = vld [vmem:[%s448_s19 + $0x8] sm:$0xff] }
  0x11   : > { %941 = vmatpush3.bf16.msra.mxu0 %v985_v8  ;;  %v653_v13 = vld [vmem:[%s448_s19] sm:$0xff]  ;;  %949 = vmatmul.mubr.msk.bf16.vlgmr.msra.gmra.mxu1 %vm550_vm2, %v986_v9  ;;  %v988_v36 = vld [vmem:[%s1153_s9 + $0x8] sm:$0xff]  }
  0x12   : > { %952 = vmatprep.subr.bf16.mxu0 %v999_v1  ;;  %959 = vmatpush3.bf16.msra.mxu1 %v675_v11  ;;  %v987_v22 = vld [vmem:[%s1150_s6] sm:$0xff]  }
  0x13   : > { %960 = vmatprep.mubr.msk.bf16.mxu1 %vm1000_vm1, %v999_v1  ;;  %v989_v37 = vld [vmem:[%s1153_s9] sm:$0xff]  }
  0x14   : > { %483 = vperm.xlu1 %984, %v478_v6   ;;  %468 = vperm.xlu0 %983, %v463_v7   ;;  %v922_v52 = vld [vmem:[%s1152_s8] ss:$0 sm:$0xff] }
  0x15   : > { %v923_v62 = vld [vmem:[%s1154_s10] ss:$0 sm:$0xff] }
  0x18   : > { %659 = vperm.xlu1 %984, %v654_v12   ;;  %656 = vperm.xlu0 %983, %v653_v13  }
  0x8b   : > { %v481_v16 = vpop.permute.xlu1 %480  ;;  %v466_v17 = vpop.permute.xlu0 %465 }
  0x8c   : > { %vm470_vm4 = vcmp.eq.s32.totalorder %v466_v17, %v461_v15  ;;  %vm485_vm7 = vcmp.eq.s32.totalorder %v481_v16, %v461_v15 }
  0x8d   : > { %v909_v20 = vsel %vm470_vm4, 1.0, %v999_v1  ;;  %v911_v29 = vsel %vm485_vm7, 1.0, %v999_v1 }
  0x8f   : > { %v484_v18 = vpop.permute.xlu1 %483  ;;  %v469_v19 = vpop.permute.xlu0 %468 }
  0x90   : > { %vm471_vm5 = vcmp.eq.s32.totalorder %v469_v19, %v461_v15  ;;  %vm486_vm8 = vcmp.eq.s32.totalorder %v484_v18, %v461_v15 }
  0x91   : > { %v910_v21 = vsel %vm471_vm5, 1.0, %v999_v1  ;;  %v912_v30 = vsel %vm486_vm8, 1.0, %v999_v1 }
  0x92   : > { %v476_v23 = vpack.c.bf16 %v910_v21, %v909_v20  ;;  %v491_v31 = vpack.c.bf16 %v912_v30, %v911_v29 }
  0x93   : > { %v660_v24 = vpop.permute.xlu1 %659  ;;  %v657_v25 = vpop.permute.xlu0 %656 }
  0x94   : > { %vm662_vm9 = vcmp.eq.s32.totalorder %v660_v24, %v461_v15  ;;  %vm661_vm10 = vcmp.eq.s32.totalorder %v657_v25, %v461_v15  ;;  %943 = vmatmul.mubr.msk.bf16.vlgmr.msra.gmra.mxu0 %vm500_vm6, %v476_v23 }
  0x95   : > { %v920_v26 = vsel %vm662_vm9, 1.0, %v999_v1  ;;  %v919_v27 = vsel %vm661_vm10, 1.0, %v999_v1  ;;  %953 = vmatpush3.bf16.msra.mxu0 %v987_v22  ;;  %954 = vmatprep.mubr.msk.bf16.mxu0 %vm1000_vm1, %v999_v1 }
  0x96   : > { %v667_v28 = vpack.c.bf16 %v920_v26, %v919_v27  ;;  %964 = vmatprep.subr.bf16.mxu0 %v999_v1 }
  0x98   : > { %961 = vmatmul.mubr.msk.bf16.vlgmr.msra.gmra.mxu1 %vm669_vm11, %v667_v28 }
  0x9c   : > { %955 = vmatmul.mubr.msk.bf16.vlgmr.msra.gmra.mxu0 %vm500_vm6, %v491_v31 }
  0x9d   : > { %968 = vmatprep.mubr.msk.bf16.mxu0 %vm1000_vm1, %v999_v1  ;;  %965 = vmatpush3.bf16.msra.mxu0 %v988_v36 }
  0x9e   : > { %966 = vmatprep.subr.bf16.mxu0 %v999_v1 }
  0xa1   : > { %967 = vmatpush3.bf16.msra.mxu0 %v989_v37 }
  0xd1   : > { %v592_v32 = vpop.f32.mrf.mxu1 }
  0xd3   : > { %v950_v33 = vpop.f32.mrf.mxu1 }
  0xd5   : > { %v595_v34 = vpop.f32.mrf.mxu1 }
  0xd7   : > { %v951_v35 = vpop.f32.mrf.mxu1 }
 0x154   : > { %v538_v38 = vpop.f32.mrf.mxu0 }
 0x155   : > { %v593_v44 = vadd.f32 %v592_v32, %v538_v38 }
 0x156   : > { %v944_v39 = vpop.f32.mrf.mxu0 }
 0x158   : > { %v541_v40 = vpop.f32.mrf.mxu0  ;;  %v711_v41 = vpop.f32.mrf.mxu1 }
 0x159   : > { %v596_v50 = vadd.f32 %v595_v34, %v541_v40 }
 0x15a   : > { %v945_v42 = vpop.f32.mrf.mxu0  ;;  %v962_v43 = vpop.f32.mrf.mxu1 }
 0x15c   : > { %v644_v45 = vpop.f32.mrf.mxu0  ;;  %v714_v46 = vpop.f32.mrf.mxu1 }
 0x15d   : > { %v651_v47 = vadd.f32 %v644_v45, %v593_v44 }
 0x15e   : > { %v956_v48 = vpop.f32.mrf.mxu0  ;;  %v963_v49 = vpop.f32.mrf.mxu1 }
 0x15f   : > { %v718_v51 = vadd.f32 %v711_v41, %v651_v47 }
 0x160   : > { %v647_v53 = vpop.f32.mrf.mxu0 }
 0x161   : > { %v652_v54 = vadd.f32 %v647_v53, %v596_v50  ;;  %v727_v56 = vadd.f32 %v922_v52, %v718_v51 }
 0x162   : > { %v957_v55 = vpop.f32.mrf.mxu0 }
 0x163   : > { %v719_v57 = vadd.f32 %v714_v46, %v652_v54  ;;  %v729_v59 = vmax.f32 %v727_v56, 0.0 }
 0x165   : > { %v728_v58 = vadd.f32 %v922_v52, %v719_v57 }
 0x167   : > { %v730_v60 = vmax.f32 %v728_v58, 0.0 }
 0x169   : > { %v731_v61 = vpack.c.bf16 %v730_v60, %v729_v59 }
 0x16b   : > { %969 = vmatmul.mubr.msk.bf16.vlgmr.msra.gmra.mxu0 %vm755_vm12, %v731_v61 }
 0x22b   : > { %v793_v63 = vpop.f32.mrf.mxu0 }
 0x22c   : > { %v794_v0 = vadd.f32 %v923_v62, %v793_v63 }
 0x22d   : > { %v970_v1 = vpop.f32.mrf.mxu0 }
 0x22e   : > { %800 = vst.msk [vmem:[%s454_s16] sm:$0xff] %vm550_vm2, %v794_v0 }
 0x22f   : > { %v796_v2 = vpop.f32.mrf.mxu0 }
 0x230   : > { %v797_v3 = vadd.f32 %v923_v62, %v796_v2 }
 0x231   : > { %v971_v4 = vpop.f32.mrf.mxu0 }
 0x232   : > { %801 = vst.msk [vmem:[%s454_s16 + $0x8] sm:$0xff] %vm550_vm2, %v797_v3 }
 0x233 PF: > { %s21_s17 = sadd.s32 1, %s996_s17  }
 0x234   : > { %p18_p4 = scmp.ge.s32.totalorder %s21_s17, 4  }
 0x236   :  { %20 = sbr.rel (!%p18_p4) target bundleno = 1 (0x1), region = 103 }

// kernel: tpu_custom_call.1
= control target key start
LH: loop header
LB: loop body
LE: loop exit
PB: predicated region body
PF: predicated region fallthrough
CT: control target
= control target key end

     0   :  { %s1061_s17 = smov 0   ;;  %s1144_s0 = inlined_call_operand.vmem [shape: bf16[32,8], index: 0, kind: input, shape index: {}]   ;;  %s1145_s1 = inlined_call_operand.vmem [shape: s32[32,1], index: 1, kind: input, shape index: {}]   ;;  %s1146_s2 = inlined_call_operand.vmem [shape: s32[32,1], index: 2, kind: input, shape index: {}]   ;;  %s1147_s3 = inlined_call_operand.vmem [shape: s32[32,1], index: 3, kind: input, shape index: {}]   ;;  %s1148_s4 = inlined_call_operand.vmem [shape: bf16[8,32], index: 4, kind: input, shape index: {}]   ;;  %s1149_s5 = inlined_call_operand.vmem [shape: bf16[16,32], index: 5, kind: input, shape index: {}]   ;;  %s1150_s6 = inlined_call_operand.vmem [shape: bf16[16,32], index: 6, kind: input, shape index: {}]   ;;  %s1151_s7 = inlined_call_operand.vmem [shape: bf16[2,32], index: 7, kind: input, shape index: {}]   ;;  %s1152_s8 = inlined_call_operand.vmem [shape: f32[1,32], index: 8, kind: input, shape index: {}]   ;;  %s1153_s9 = inlined_call_operand.vmem [shape: bf16[32,8], index: 9, kind: input, shape index: {}]   ;;  %s1154_s10 = inlined_call_operand.vmem [shape: f32[1,8], index: 10, kind: input, shape index: {}]   ;;  %s1155_s11 = inlined_call_operand.vmem [shape: f32[32,8], index: 11, kind: output, shape index: {}]  }
   0x1 LB: > { %s894_s18 = sadd.s32 4294967295, %s996_s17   ;;  %p898_p0 = scmp.ge.s32.totalorder %s996_s17, 1  ;;  %s996_s17 = sphi %s1061_s17, %s21_s17  }
   0x2   : > { %p371_p1 = scmp.lt.s32.totalorder %s996_s17, 3 }
   0x4   : > { %p372_p2 = pnand %p898_p0, %p371_p1 }
   0x5   : > { %s899_s19 = sshll.u32 (!%p372_p2), %s894_s18, 1 }
   0x6   : > { %375 = sbr.rel (%p372_p2) target bundleno = 563 (0x233), region = 64  ;;  %p427_p3 = scmp.lt.s32.totalorder (!%p372_p2), %s899_s19, 3 }
   0xb   : > { %v998_v0 = vmov 0   ;;  %v999_v1 = vmov 0.0   ;;  %s1157_s19 = smov (!%p427_p3, %s899_s19), 3  ;;  %v459_v2 = vld [vmem:[%s1148_s4] sm:$0xf]  ;;  %vm554_vm0 = vcmask 1043456   ;;  %v460_v14 = vlaneseq }
   0xc   : > { %984 = vset.pattern.permute.xlu1 %v998_v0  ;;  %983 = vset.pattern.permute.xlu0 %v998_v0  ;;  %v556_v3 = vsel %vm554_vm0, %v459_v2, 0  ;;  %s1074_s22 = sshll.u32 %s1157_s19, 3  ;;  %s900_s23 = sshll.u32 %s1157_s19, 2  ;;  %vm1000_vm1 = vmmov 0   ;;  %v985_v8 = vld [vmem:[%s1149_s5] sm:$0xff]   ;;  %vm550_vm2 = vcmask 64512  }
   0xd   : > { %946 = vmatprep.subr.bf16.mxu1 %v999_v1  ;;  %940 = vmatprep.subr.bf16.mxu0 %v999_v1  ;;  %s442_s26 = scalar_lea.vmem %s1146_s2, %s1074_s22  ;;  %s436_s29 = scalar_lea.vmem %s1145_s1, %s1074_s22  ;;  %v668_v10 = vld [vmem:[%s1151_s7] sm:$0x1]  ;;  %vm673_vm3 = vcmask 1040384   ;;  %v461_v15 = vand.u32 127, %v460_v14  ;;  %vm500_vm6 = vcmask 130048   ;;  %vm669_vm11 = vcmask 15360  }
   0xe   : > { %947 = vmatpush3.bf16.msra.mxu1 %v556_v3  ;;  %948 = vmatprep.mubr.msk.bf16.mxu1 %vm1000_vm1, %v999_v1  ;;  %v477_v4 = vld [vmem:[%s442_s26] sm:$0xff]  ;;  %s430_s13 = scalar_lea.vmem %s1144_s0, %s900_s23  ;;  %v478_v6 = vld [vmem:[%s442_s26 + $0x8] sm:$0xff]  ;;  %s448_s19 = scalar_lea.vmem %s1147_s3, %s1074_s22  ;;  %v675_v11 = vsel %vm673_vm3, %v668_v10, 0  ;;  %vm755_vm12 = vcmask 261120  }
   0xf   : > { %942 = vmatprep.mubr.msk.bf16.mxu0 %vm1000_vm1, %v999_v1  ;;  %v462_v5 = vld [vmem:[%s436_s29] sm:$0xff]  ;;  %958 = vmatprep.subr.bf16.mxu1 %v999_v1  ;;  %v463_v7 = vld [vmem:[%s436_s29 + $0x8] sm:$0xff]  ;;  %s454_s16 = scalar_lea.vmem %s1155_s11, %s1074_s22 }
  0x10   : > { %480 = vperm.xlu1 %984, %v477_v4   ;;  %465 = vperm.xlu0 %983, %v462_v5   ;;  %v986_v9 = vld [vmem:[%s430_s13] sm:$0xff]   ;;  %v654_v12 = vld [vmem:[%s448_s19 + $0x8] sm:$0xff] }
  0x11   : > { %941 = vmatpush3.bf16.msra.mxu0 %v985_v8  ;;  %v653_v13 = vld [vmem:[%s448_s19] sm:$0xff]  ;;  %949 = vmatmul.mubr.msk.bf16.vlgmr.msra.gmra.mxu1 %vm550_vm2, %v986_v9  ;;  %v988_v36 = vld [vmem:[%s1153_s9 + $0x8] sm:$0xff]  }
  0x12   : > { %952 = vmatprep.subr.bf16.mxu0 %v999_v1  ;;  %959 = vmatpush3.bf16.msra.mxu1 %v675_v11  ;;  %v987_v22 = vld [vmem:[%s1150_s6] sm:$0xff]  }
  0x13   : > { %960 = vmatprep.mubr.msk.bf16.mxu1 %vm1000_vm1, %v999_v1  ;;  %v989_v37 = vld [vmem:[%s1153_s9] sm:$0xff]  }
  0x14   : > { %483 = vperm.xlu1 %984, %v478_v6   ;;  %468 = vperm.xlu0 %983, %v463_v7   ;;  %v922_v52 = vld [vmem:[%s1152_s8] ss:$0 sm:$0xff] }
  0x15   : > { %v923_v62 = vld [vmem:[%s1154_s10] ss:$0 sm:$0xff] }
  0x18   : > { %659 = vperm.xlu1 %984, %v654_v12   ;;  %656 = vperm.xlu0 %983, %v653_v13  }
  0x8b   : > { %v481_v16 = vpop.permute.xlu1 %480  ;;  %v466_v17 = vpop.permute.xlu0 %465 }
  0x8c   : > { %vm470_vm4 = vcmp.eq.s32.totalorder %v466_v17, %v461_v15  ;;  %vm485_vm7 = vcmp.eq.s32.totalorder %v481_v16, %v461_v15 }
  0x8d   : > { %v909_v20 = vsel %vm470_vm4, 1.0, %v999_v1  ;;  %v911_v29 = vsel %vm485_vm7, 1.0, %v999_v1 }
  0x8f   : > { %v484_v18 = vpop.permute.xlu1 %483  ;;  %v469_v19 = vpop.permute.xlu0 %468 }
  0x90   : > { %vm471_vm5 = vcmp.eq.s32.totalorder %v469_v19, %v461_v15  ;;  %vm486_vm8 = vcmp.eq.s32.totalorder %v484_v18, %v461_v15 }
  0x91   : > { %v910_v21 = vsel %vm471_vm5, 1.0, %v999_v1  ;;  %v912_v30 = vsel %vm486_vm8, 1.0, %v999_v1 }
  0x92   : > { %v476_v23 = vpack.c.bf16 %v910_v21, %v909_v20  ;;  %v491_v31 = vpack.c.bf16 %v912_v30, %v911_v29 }
  0x93   : > { %v660_v24 = vpop.permute.xlu1 %659  ;;  %v657_v25 = vpop.permute.xlu0 %656 }
  0x94   : > { %vm662_vm9 = vcmp.eq.s32.totalorder %v660_v24, %v461_v15  ;;  %vm661_vm10 = vcmp.eq.s32.totalorder %v657_v25, %v461_v15  ;;  %943 = vmatmul.mubr.msk.bf16.vlgmr.msra.gmra.mxu0 %vm500_vm6, %v476_v23 }
  0x95   : > { %v920_v26 = vsel %vm662_vm9, 1.0, %v999_v1  ;;  %v919_v27 = vsel %vm661_vm10, 1.0, %v999_v1  ;;  %953 = vmatpush3.bf16.msra.mxu0 %v987_v22  ;;  %954 = vmatprep.mubr.msk.bf16.mxu0 %vm1000_vm1, %v999_v1 }
  0x96   : > { %v667_v28 = vpack.c.bf16 %v920_v26, %v919_v27  ;;  %964 = vmatprep.subr.bf16.mxu0 %v999_v1 }
  0x98   : > { %961 = vmatmul.mubr.msk.bf16.vlgmr.msra.gmra.mxu1 %vm669_vm11, %v667_v28 }
  0x9c   : > { %955 = vmatmul.mubr.msk.bf16.vlgmr.msra.gmra.mxu0 %vm500_vm6, %v491_v31 }
  0x9d   : > { %968 = vmatprep.mubr.msk.bf16.mxu0 %vm1000_vm1, %v999_v1  ;;  %965 = vmatpush3.bf16.msra.mxu0 %v988_v36 }
  0x9e   : > { %966 = vmatprep.subr.bf16.mxu0 %v999_v1 }
  0xa1   : > { %967 = vmatpush3.bf16.msra.mxu0 %v989_v37 }
  0xd1   : > { %v592_v32 = vpop.f32.mrf.mxu1 }
  0xd3   : > { %v950_v33 = vpop.f32.mrf.mxu1 }
  0xd5   : > { %v595_v34 = vpop.f32.mrf.mxu1 }
  0xd7   : > { %v951_v35 = vpop.f32.mrf.mxu1 }
 0x154   : > { %v538_v38 = vpop.f32.mrf.mxu0 }
 0x155   : > { %v593_v44 = vadd.f32 %v592_v32, %v538_v38 }
 0x156   : > { %v944_v39 = vpop.f32.mrf.mxu0 }
 0x158   : > { %v541_v40 = vpop.f32.mrf.mxu0  ;;  %v711_v41 = vpop.f32.mrf.mxu1 }
 0x159   : > { %v596_v50 = vadd.f32 %v595_v34, %v541_v40 }
 0x15a   : > { %v945_v42 = vpop.f32.mrf.mxu0  ;;  %v962_v43 = vpop.f32.mrf.mxu1 }
 0x15c   : > { %v644_v45 = vpop.f32.mrf.mxu0  ;;  %v714_v46 = vpop.f32.mrf.mxu1 }
 0x15d   : > { %v651_v47 = vadd.f32 %v644_v45, %v593_v44 }
 0x15e   : > { %v956_v48 = vpop.f32.mrf.mxu0  ;;  %v963_v49 = vpop.f32.mrf.mxu1 }
 0x15f   : > { %v718_v51 = vadd.f32 %v711_v41, %v651_v47 }
 0x160   : > { %v647_v53 = vpop.f32.mrf.mxu0 }
 0x161   : > { %v652_v54 = vadd.f32 %v647_v53, %v596_v50  ;;  %v727_v56 = vadd.f32 %v922_v52, %v718_v51 }
 0x162   : > { %v957_v55 = vpop.f32.mrf.mxu0 }
 0x163   : > { %v719_v57 = vadd.f32 %v714_v46, %v652_v54  ;;  %v729_v59 = vmax.f32 %v727_v56, 0.0 }
 0x165   : > { %v728_v58 = vadd.f32 %v922_v52, %v719_v57 }
 0x167   : > { %v730_v60 = vmax.f32 %v728_v58, 0.0 }
 0x169   : > { %v731_v61 = vpack.c.bf16 %v730_v60, %v729_v59 }
 0x16b   : > { %969 = vmatmul.mubr.msk.bf16.vlgmr.msra.gmra.mxu0 %vm755_vm12, %v731_v61 }
 0x22b   : > { %v793_v63 = vpop.f32.mrf.mxu0 }
 0x22c   : > { %v794_v0 = vadd.f32 %v923_v62, %v793_v63 }
 0x22d   : > { %v970_v1 = vpop.f32.mrf.mxu0 }
 0x22e   : > { %800 = vst.msk [vmem:[%s454_s16] sm:$0xff] %vm550_vm2, %v794_v0 }
 0x22f   : > { %v796_v2 = vpop.f32.mrf.mxu0 }
 0x230   : > { %v797_v3 = vadd.f32 %v923_v62, %v796_v2 }
 0x231   : > { %v971_v4 = vpop.f32.mrf.mxu0 }
 0x232   : > { %801 = vst.msk [vmem:[%s454_s16 + $0x8] sm:$0xff] %vm550_vm2, %v797_v3 }
 0x233 PF: > { %s21_s17 = sadd.s32 1, %s996_s17  }
 0x234   : > { %p18_p4 = scmp.ge.s32.totalorder %s21_s17, 4  }
 0x236   :  { %20 = sbr.rel (!%p18_p4) target bundleno = 1 (0x1), region = 103 }

</bundles_post_ra>
